<compile_context>
chip_gen: v7x
topology: tpu7x:2x2x1
jax: 0.10.0
libtpu: 0.0.40
codegen_flags: <defaults>
</compile_context>

<pallas_src>
import jax
import jax.numpy as jnp
from jax.experimental import pallas as pl
from jax.experimental.pallas import tpu as pltpu

# Small, module-consistent shapes.
B, T, F_IN, BFL, E, N_CLS = 2, 8, 64, 64, 32, 5
BN_EPS = 1e-5
LANES = 128                      # lane-dense width; also 4*E (gate width)


def _sigmoid_kernel(x):
    # exp on EUP + approximate reciprocal on EUP: frees VALU divide slots.
    return pl.reciprocal(1.0 + jnp.exp(-x), approx=True)


# ---------------------------------------------------------------------------
# Single fused kernel: embed (backbone + Linear2 folded) + 2-layer LSTM + fc.
# Inputs: x slab, f32 weight slab, bf16 LSTM weight slab, bias/BN slab.
# ---------------------------------------------------------------------------
def fused_kernel(x_ref, w32_ref, wbf_ref, bsl_ref, o_ref):
    f32, bf16 = jnp.float32, jnp.bfloat16

    # ---- unpack slabs with static slices (cheap) ----------------------------
    w32 = w32_ref[...]                       # (F_IN + E, 128) f32
    we = w32[0:F_IN, 0:E]                    # (64, 32) embed weight (backbone folded)
    wf = w32[F_IN:F_IN + E, :]               # (32, 128) fc weight, lane-padded

    bsl = bsl_ref[...]                       # (8, 128) f32
    be = bsl[0:1, 0:E]                       # embed bias (backbone folded)
    gamma = bsl[1:2, 0:E]
    beta = bsl[2:3, 0:E]
    bl1 = bsl[3:4, :]                        # layer-1 gate bias (b2 folded in)
    bl2 = bsl[4:5, :]
    bfc = bsl[5:6, :]                        # fc bias, lane-padded

    wbf = wbf_ref[...]                       # (4E, 128) bf16
    wc1_x = wbf[0:E, :]                      # layer-1 input weight (w2 folded in)
    wc1_h = wbf[E:2 * E, :]
    wc2_x = wbf[2 * E:3 * E, :]
    wc2_h = wbf[3 * E:4 * E, :]

    # ---- embed: folded Linear -> training-mode BatchNorm1d -> ELU -----------
    # Kept in f32: this matmul feeds BatchNorm over a batch of 2, whose
    # 1/sqrt(var) can amplify rounding noise.
    x = x_ref[...]                                           # (B*T, F_IN)
    h = jnp.dot(x, we, preferred_element_type=f32) + be      # (B*T, E)

    # Row layout is b*T + t, so the B samples of timestep t are row t of each
    # T-row block; reduce across sublane-aligned row blocks.
    blocks = [h[b * T:(b + 1) * T] for b in range(B)]        # B x (T, E)
    mu = blocks[0]
    for hb in blocks[1:]:
        mu = mu + hb
    mu = mu * (1.0 / B)
    var = (blocks[0] - mu) ** 2
    for hb in blocks[1:]:
        var = var + (hb - mu) ** 2
    var = var * (1.0 / B)
    scale = jax.lax.rsqrt(var + BN_EPS) * gamma              # (T, E)
    act = []
    for hb in blocks:
        v = (hb - mu) * scale + beta
        act.append(jnp.where(v > 0, v, jnp.exp(v) - 1.0))    # ELU(alpha=1)
    # Second embed Linear (w2,b2) is folded into wc1_x / bl1; `act` blocks
    # feed the LSTM directly (no extra matmul, no concat into one slab).

    # ---- 2-layer LSTM: sequence axis = B, batch axis = T --------------------
    # Split input/recurrent matmuls (no lane concat); s == 0 specialization
    # skips the recurrent matmul and f*c term since h_prev = c_prev = 0.
    def cell(x_s, h_prev, c_prev, wx, wh, b):
        g = jnp.dot(x_s.astype(bf16), wx, preferred_element_type=f32) + b
        if h_prev is not None:
            g = g + jnp.dot(h_prev.astype(bf16), wh, preferred_element_type=f32)
        i_g = _sigmoid_kernel(g[:, 0:E])
        f_g = _sigmoid_kernel(g[:, E:2 * E])
        g_g = jnp.tanh(g[:, 2 * E:3 * E])
        o_g = _sigmoid_kernel(g[:, 3 * E:4 * E])
        c = i_g * g_g if c_prev is None else f_g * c_prev + i_g * g_g
        return o_g * jnp.tanh(c), c

    h1 = c1 = h2 = c2 = None
    outs = []
    for s in range(B):                       # static unroll: seq_len = B = 2
        h1, c1 = cell(act[s], h1, c1, wc1_x, wc1_h, bl1)
        h2, c2 = cell(h1, h2, c2, wc2_x, wc2_h, bl2)
        outs.append(h2)
    h2_all = jnp.concatenate(outs, axis=0)                   # (B*T, E)

    # ---- final fc: one matmul, one lane-dense (B*T, 128) store --------------
    o_ref[...] = jnp.dot(h2_all, wf, preferred_element_type=f32) + bfc


def _full(shape):
    return pl.BlockSpec(shape, lambda i: (0,) * len(shape))


@jax.jit
def lstm_tcm_forward(x, kp):
    x2 = x.reshape(B * T, F_IN)                               # free reshape
    out = pl.pallas_call(
        fused_kernel,
        out_shape=jax.ShapeDtypeStruct((B * T, LANES), jnp.float32),
        grid=(1,),
        in_specs=[
            _full((B * T, F_IN)),
            _full((F_IN + E, LANES)),
            _full((4 * E, LANES)),
            _full((8, LANES)),
        ],
        out_specs=_full((B * T, LANES)),
        compiler_params=pltpu.CompilerParams(
            dimension_semantics=("arbitrary",)),   # single TC; workload tiny
    )(x2, kp["w32"], kp["wbf"], kp["bsl"])
    # TODO(synk): for many independent (B,T) examples, add a leading grid axis
    # marked "parallel" so v7x's second TensorCore splits the batch.
    return out[:, :N_CLS].reshape(B, T, N_CLS)                # lane-dense slice


# ---------------------------------------------------------------------------
# Deterministic parameter init (PyTorch shapes, pre-transposed) + host-side
# one-time packing into 3 slabs (fold backbone + embed Linear2, lane-pad).
# ---------------------------------------------------------------------------
def init_params(key):
    ks = jax.random.split(key, 16)
    nrm = lambda k, shp, s=0.1: (s * jax.random.normal(k, shp)).astype(jnp.float32)
    p = {}
    # frozen backbone stand-in: Linear(F_IN, BFL)
    # TODO(synk): real backbone is an arbitrary frozen external module.
    p["wbT"] = nrm(ks[0], (F_IN, BFL))
    p["bb"] = nrm(ks[1], (1, BFL))
    # embed_layer: Linear(BFL,E) -> BatchNorm1d(E) -> ELU -> Linear(E,E)
    p["w1T"] = nrm(ks[2], (BFL, E))
    p["b1"] = nrm(ks[3], (1, E))
    p["gamma"] = jnp.ones((1, E), jnp.float32)
    p["beta"] = jnp.zeros((1, E), jnp.float32)
    p["w2T"] = nrm(ks[4], (E, E))
    p["b2"] = nrm(ks[5], (1, E))
    # LSTM(E, E, num_layers=2): gate order i, f, g, o
    p["wih1T"] = nrm(ks[6], (E, 4 * E))
    p["whh1T"] = nrm(ks[7], (E, 4 * E))
    p["b_l1"] = nrm(ks[8], (1, 4 * E)) + nrm(ks[9], (1, 4 * E))     # b_ih + b_hh
    p["wih2T"] = nrm(ks[10], (E, 4 * E))
    p["whh2T"] = nrm(ks[11], (E, 4 * E))
    p["b_l2"] = nrm(ks[12], (1, 4 * E)) + nrm(ks[13], (1, 4 * E))
    # fc: Linear(E, 5)
    p["wfT"] = nrm(ks[14], (E, N_CLS))
    p["bf"] = nrm(ks[15], (1, N_CLS))
    return p


def pack_kernel_params(p):
    f32, bf16 = jnp.float32, jnp.bfloat16

    def lane_pad(v, width=LANES):
        return jnp.pad(v, ((0, 0), (0, width - v.shape[1])))

    # Fold the frozen linear backbone stand-in into the first embed Linear:
    #   (x @ Wb + bb) @ W1 + b1 == x @ (Wb @ W1) + (bb @ W1 + b1)
    # TODO(synk): fold is only valid for a *linear* backbone stand-in; drop it
    # if the real frozen backbone is nonlinear.
    we = (p["wbT"] @ p["w1T"]).astype(f32)                    # (F_IN, E)
    be = p["bb"] @ p["w1T"] + p["b1"]                         # (1, E)

    # f32 weight slab: [embed weight (lane-padded) ; fc weight (lane-padded)]
    w32 = jnp.concatenate([lane_pad(we), lane_pad(p["wfT"])],
                          axis=0).astype(f32)                 # (F_IN+E, 128)

    # bf16 LSTM weight slab; embed Linear2 folded into layer-1 input weight:
    #   (h @ w2 + b2) @ Wih1 + ... == h @ (w2 @ Wih1) + (b2 @ Wih1) + ...
    wc1_x = p["w2T"] @ p["wih1T"]                             # (E, 4E), exact
    wbf = jnp.concatenate([wc1_x, p["whh1T"], p["wih2T"], p["whh2T"]],
                          axis=0).astype(bf16)                # (4E, 128)

    # bias / BN slab, lane-padded to 128, 8 sublanes total.
    bl1 = p["b2"] @ p["wih1T"] + p["b_l1"]                    # (1, 4E)
    bsl = jnp.concatenate([
        lane_pad(be), lane_pad(p["gamma"]), lane_pad(p["beta"]),
        bl1, p["b_l2"], lane_pad(p["bf"]),
        jnp.zeros((2, LANES), f32),
    ], axis=0).astype(f32)                                    # (8, 128)

    return {"w32": w32, "wbf": wbf, "bsl": bsl}


# ---------------------------------------------------------------------------
# Pure-JAX reference (mirrors PyTorch forward semantics exactly, all f32)
# ---------------------------------------------------------------------------
def _sigmoid_ref(x):
    return 1.0 / (1.0 + jnp.exp(-x))


def ref_forward(x, p):
    outs = []
    for t in range(T):
        xt = x[:, t, :]
        h = xt @ p["wbT"] + p["bb"]
        h = h @ p["w1T"] + p["b1"]
        mu = h.mean(axis=0, keepdims=True)
        var = ((h - mu) ** 2).mean(axis=0, keepdims=True)
        h = (h - mu) / jnp.sqrt(var + BN_EPS) * p["gamma"] + p["beta"]
        h = jnp.where(h > 0, h, jnp.exp(h) - 1.0)
        h = h @ p["w2T"] + p["b2"]
        outs.append(h)
    emb = jnp.stack(outs, axis=1)                             # (B, T, E)

    def run_layer(seq, wihT, whhT, b):
        h = jnp.zeros((seq.shape[1], E), jnp.float32)
        c = jnp.zeros_like(h)
        hs = []
        for s in range(seq.shape[0]):
            gates = seq[s] @ wihT + h @ whhT + b
            i = _sigmoid_ref(gates[:, :E])
            f = _sigmoid_ref(gates[:, E:2 * E])
            g = jnp.tanh(gates[:, 2 * E:3 * E])
            o = _sigmoid_ref(gates[:, 3 * E:])
            c = f * c + i * g
            h = o * jnp.tanh(c)
            hs.append(h)
        return jnp.stack(hs, axis=0)

    h1 = run_layer(emb, p["wih1T"], p["whh1T"], p["b_l1"])
    h2 = run_layer(h1, p["wih2T"], p["whh2T"], p["b_l2"])
    return h2 @ p["wfT"] + p["bf"]


if __name__ == "__main__":
    key = jax.random.PRNGKey(0)
    kx, kp_key = jax.random.split(key)
    x = jax.random.normal(kx, (B, T, F_IN), dtype=jnp.float32)
    params = init_params(kp_key)
    kparams = pack_kernel_params(params)

    out = lstm_tcm_forward(x, kparams)
    out = jax.block_until_ready(out)
    assert out.shape == (B, T, N_CLS), out.shape

    ref = ref_forward(x, params)
    assert jnp.allclose(out, ref, atol=5e-2, rtol=5e-2), float(
        jnp.max(jnp.abs(out - ref)))

    print("KERNEL_OK")
</pallas_src>

<mosaic_0001>
module attributes {stable_mosaic.version = 11 : i64} {
  func.func @fused_kernel(%arg0: i32, %arg1: memref<16x64xf32, #tpu.memory_space<vmem>>, %arg2: memref<96x128xf32, #tpu.memory_space<vmem>>, %arg3: memref<128x128xbf16, #tpu.memory_space<vmem>>, %arg4: memref<8x128xf32, #tpu.memory_space<vmem>>, %arg5: memref<16x128xf32, #tpu.memory_space<vmem>>) attributes {dimension_semantics = [#tpu.dimension_semantics<arbitrary>], iteration_bounds = array<i64: 1>, scalar_prefetch = 0 : i64, scratch_operands = 0 : i64, tpu.core_type = #tpu.core_type<tc>, window_params = [{pipeline_mode = #tpu.pipeline_mode<synchronous>, transform_indices = @transform_0, window_bounds = array<i64: 16, 64>}, {pipeline_mode = #tpu.pipeline_mode<synchronous>, transform_indices = @transform_1, window_bounds = array<i64: 96, 128>}, {pipeline_mode = #tpu.pipeline_mode<synchronous>, transform_indices = @transform_2, window_bounds = array<i64: 128, 128>}, {pipeline_mode = #tpu.pipeline_mode<synchronous>, transform_indices = @transform_3, window_bounds = array<i64: 8, 128>}, {pipeline_mode = #tpu.pipeline_mode<synchronous>, transform_indices = @transform_4, window_bounds = array<i64: 16, 128>}]} {
    %c0 = arith.constant 0 : index
    %c0_0 = arith.constant 0 : index
    %0 = vector.load %arg2[%c0, %c0_0] : memref<96x128xf32, #tpu.memory_space<vmem>>, vector<96x128xf32>
    %1 = vector.extract_strided_slice %0 {offsets = [0, 0], sizes = [64, 32], strides = [1, 1]} : vector<96x128xf32> to vector<64x32xf32>
    %2 = vector.extract_strided_slice %0 {offsets = [64, 0], sizes = [32, 128], strides = [1, 1]} : vector<96x128xf32> to vector<32x128xf32>
    %c0_1 = arith.constant 0 : index
    %c0_2 = arith.constant 0 : index
    %3 = vector.load %arg4[%c0_1, %c0_2] : memref<8x128xf32, #tpu.memory_space<vmem>>, vector<8x128xf32>
    %4 = vector.extract_strided_slice %3 {offsets = [0, 0], sizes = [1, 32], strides = [1, 1]} : vector<8x128xf32> to vector<1x32xf32>
    %5 = vector.extract_strided_slice %3 {offsets = [1, 0], sizes = [1, 32], strides = [1, 1]} : vector<8x128xf32> to vector<1x32xf32>
    %6 = vector.extract_strided_slice %3 {offsets = [2, 0], sizes = [1, 32], strides = [1, 1]} : vector<8x128xf32> to vector<1x32xf32>
    %7 = vector.extract_strided_slice %3 {offsets = [3, 0], sizes = [1, 128], strides = [1, 1]} : vector<8x128xf32> to vector<1x128xf32>
    %8 = vector.extract_strided_slice %3 {offsets = [4, 0], sizes = [1, 128], strides = [1, 1]} : vector<8x128xf32> to vector<1x128xf32>
    %9 = vector.extract_strided_slice %3 {offsets = [5, 0], sizes = [1, 128], strides = [1, 1]} : vector<8x128xf32> to vector<1x128xf32>
    %c0_3 = arith.constant 0 : index
    %c0_4 = arith.constant 0 : index
    %10 = vector.load %arg3[%c0_3, %c0_4] : memref<128x128xbf16, #tpu.memory_space<vmem>>, vector<128x128xbf16>
    %11 = vector.extract_strided_slice %10 {offsets = [0, 0], sizes = [32, 128], strides = [1, 1]} : vector<128x128xbf16> to vector<32x128xbf16>
    %12 = vector.extract_strided_slice %10 {offsets = [32, 0], sizes = [32, 128], strides = [1, 1]} : vector<128x128xbf16> to vector<32x128xbf16>
    %13 = vector.extract_strided_slice %10 {offsets = [64, 0], sizes = [32, 128], strides = [1, 1]} : vector<128x128xbf16> to vector<32x128xbf16>
    %14 = vector.extract_strided_slice %10 {offsets = [96, 0], sizes = [32, 128], strides = [1, 1]} : vector<128x128xbf16> to vector<32x128xbf16>
    %c0_5 = arith.constant 0 : index
    %c0_6 = arith.constant 0 : index
    %15 = vector.load %arg1[%c0_5, %c0_6] : memref<16x64xf32, #tpu.memory_space<vmem>>, vector<16x64xf32>
    %cst = arith.constant dense<0.000000e+00> : vector<16x32xf32>
    %16 = tpu.matmul %15, %1, %cst {dimension_numbers = #tpu.dot_dimension_numbers<[1], [0], [0], [1], [0, 0, 1, 1], [], []>} : vector<16x64xf32>, vector<64x32xf32>, vector<16x32xf32> -> vector<16x32xf32>
    %17 = vector.broadcast %4 : vector<1x32xf32> to vector<16x32xf32>
    %18 = arith.addf %16, %17 : vector<16x32xf32>
    %19 = vector.extract_strided_slice %18 {offsets = [0, 0], sizes = [8, 32], strides = [1, 1]} : vector<16x32xf32> to vector<8x32xf32>
    %20 = vector.extract_strided_slice %18 {offsets = [8, 0], sizes = [8, 32], strides = [1, 1]} : vector<16x32xf32> to vector<8x32xf32>
    %21 = arith.addf %19, %20 : vector<8x32xf32>
    %cst_7 = arith.constant 5.000000e-01 : f32
    %22 = vector.broadcast %cst_7 : f32 to vector<8x32xf32>
    %23 = arith.mulf %21, %22 : vector<8x32xf32>
    %24 = arith.subf %19, %23 : vector<8x32xf32>
    %25 = arith.mulf %24, %24 : vector<8x32xf32>
    %26 = arith.subf %20, %23 : vector<8x32xf32>
    %27 = arith.mulf %26, %26 : vector<8x32xf32>
    %28 = arith.addf %25, %27 : vector<8x32xf32>
    %cst_8 = arith.constant 5.000000e-01 : f32
    %29 = vector.broadcast %cst_8 : f32 to vector<8x32xf32>
    %30 = arith.mulf %28, %29 : vector<8x32xf32>
    %cst_9 = arith.constant 9.99999974E-6 : f32
    %31 = vector.broadcast %cst_9 : f32 to vector<8x32xf32>
    %32 = arith.addf %30, %31 : vector<8x32xf32>
    %33 = math.rsqrt %32 : vector<8x32xf32>
    %34 = vector.broadcast %5 : vector<1x32xf32> to vector<8x32xf32>
    %35 = arith.mulf %33, %34 : vector<8x32xf32>
    %36 = arith.subf %19, %23 : vector<8x32xf32>
    %37 = arith.mulf %36, %35 : vector<8x32xf32>
    %38 = vector.broadcast %6 : vector<1x32xf32> to vector<8x32xf32>
    %39 = arith.addf %37, %38 : vector<8x32xf32>
    %cst_10 = arith.constant 0.000000e+00 : f32
    %40 = vector.broadcast %cst_10 : f32 to vector<8x32xf32>
    %41 = arith.cmpf ogt, %39, %40 : vector<8x32xf32>
    %42 = math.exp %39 : vector<8x32xf32>
    %cst_11 = arith.constant 1.000000e+00 : f32
    %43 = vector.broadcast %cst_11 : f32 to vector<8x32xf32>
    %44 = arith.subf %42, %43 : vector<8x32xf32>
    %45 = arith.select %41, %39, %44 : vector<8x32xi1>, vector<8x32xf32>
    %46 = arith.subf %20, %23 : vector<8x32xf32>
    %47 = arith.mulf %46, %35 : vector<8x32xf32>
    %48 = vector.broadcast %6 : vector<1x32xf32> to vector<8x32xf32>
    %49 = arith.addf %47, %48 : vector<8x32xf32>
    %cst_12 = arith.constant 0.000000e+00 : f32
    %50 = vector.broadcast %cst_12 : f32 to vector<8x32xf32>
    %51 = arith.cmpf ogt, %49, %50 : vector<8x32xf32>
    %52 = math.exp %49 : vector<8x32xf32>
    %cst_13 = arith.constant 1.000000e+00 : f32
    %53 = vector.broadcast %cst_13 : f32 to vector<8x32xf32>
    %54 = arith.subf %52, %53 : vector<8x32xf32>
    %55 = arith.select %51, %49, %54 : vector<8x32xi1>, vector<8x32xf32>
    %56 = arith.truncf %45 : vector<8x32xf32> to vector<8x32xbf16>
    %cst_14 = arith.constant dense<0.000000e+00> : vector<8x128xf32>
    %57 = tpu.matmul %56, %11, %cst_14 {dimension_numbers = #tpu.dot_dimension_numbers<[1], [0], [0], [1], [0, 0, 1, 1], [], []>} : vector<8x32xbf16>, vector<32x128xbf16>, vector<8x128xf32> -> vector<8x128xf32>
    %58 = vector.broadcast %7 : vector<1x128xf32> to vector<8x128xf32>
    %59 = arith.addf %57, %58 : vector<8x128xf32>
    %60 = vector.extract_strided_slice %59 {offsets = [0, 0], sizes = [8, 32], strides = [1, 1]} : vector<8x128xf32> to vector<8x32xf32>
    %cst_15 = arith.constant 0.000000e+00 : f32
    %61 = vector.broadcast %cst_15 : f32 to vector<8x32xf32>
    %62 = arith.subf %61, %60 : vector<8x32xf32>
    %63 = math.exp %62 : vector<8x32xf32>
    %cst_16 = arith.constant 1.000000e+00 : f32
    %64 = vector.broadcast %cst_16 : f32 to vector<8x32xf32>
    %65 = arith.addf %64, %63 : vector<8x32xf32>
    %66 = tpu.reciprocal %65 {approx = true} : vector<8x32xf32> -> vector<8x32xf32>
    %67 = vector.extract_strided_slice %59 {offsets = [0, 64], sizes = [8, 32], strides = [1, 1]} : vector<8x128xf32> to vector<8x32xf32>
    %68 = math.tanh %67 : vector<8x32xf32>
    %69 = vector.extract_strided_slice %59 {offsets = [0, 96], sizes = [8, 32], strides = [1, 1]} : vector<8x128xf32> to vector<8x32xf32>
    %cst_17 = arith.constant 0.000000e+00 : f32
    %70 = vector.broadcast %cst_17 : f32 to vector<8x32xf32>
    %71 = arith.subf %70, %69 : vector<8x32xf32>
    %72 = math.exp %71 : vector<8x32xf32>
    %cst_18 = arith.constant 1.000000e+00 : f32
    %73 = vector.broadcast %cst_18 : f32 to vector<8x32xf32>
    %74 = arith.addf %73, %72 : vector<8x32xf32>
    %75 = tpu.reciprocal %74 {approx = true} : vector<8x32xf32> -> vector<8x32xf32>
    %76 = arith.mulf %66, %68 : vector<8x32xf32>
    %77 = math.tanh %76 : vector<8x32xf32>
    %78 = arith.mulf %75, %77 : vector<8x32xf32>
    %79 = arith.truncf %78 : vector<8x32xf32> to vector<8x32xbf16>
    %cst_19 = arith.constant dense<0.000000e+00> : vector<8x128xf32>
    %80 = tpu.matmul %79, %13, %cst_19 {dimension_numbers = #tpu.dot_dimension_numbers<[1], [0], [0], [1], [0, 0, 1, 1], [], []>} : vector<8x32xbf16>, vector<32x128xbf16>, vector<8x128xf32> -> vector<8x128xf32>
    %81 = vector.broadcast %8 : vector<1x128xf32> to vector<8x128xf32>
    %82 = arith.addf %80, %81 : vector<8x128xf32>
    %83 = vector.extract_strided_slice %82 {offsets = [0, 0], sizes = [8, 32], strides = [1, 1]} : vector<8x128xf32> to vector<8x32xf32>
    %cst_20 = arith.constant 0.000000e+00 : f32
    %84 = vector.broadcast %cst_20 : f32 to vector<8x32xf32>
    %85 = arith.subf %84, %83 : vector<8x32xf32>
    %86 = math.exp %85 : vector<8x32xf32>
    %cst_21 = arith.constant 1.000000e+00 : f32
    %87 = vector.broadcast %cst_21 : f32 to vector<8x32xf32>
    %88 = arith.addf %87, %86 : vector<8x32xf32>
    %89 = tpu.reciprocal %88 {approx = true} : vector<8x32xf32> -> vector<8x32xf32>
    %90 = vector.extract_strided_slice %82 {offsets = [0, 64], sizes = [8, 32], strides = [1, 1]} : vector<8x128xf32> to vector<8x32xf32>
    %91 = math.tanh %90 : vector<8x32xf32>
    %92 = vector.extract_strided_slice %82 {offsets = [0, 96], sizes = [8, 32], strides = [1, 1]} : vector<8x128xf32> to vector<8x32xf32>
    %cst_22 = arith.constant 0.000000e+00 : f32
    %93 = vector.broadcast %cst_22 : f32 to vector<8x32xf32>
    %94 = arith.subf %93, %92 : vector<8x32xf32>
    %95 = math.exp %94 : vector<8x32xf32>
    %cst_23 = arith.constant 1.000000e+00 : f32
    %96 = vector.broadcast %cst_23 : f32 to vector<8x32xf32>
    %97 = arith.addf %96, %95 : vector<8x32xf32>
    %98 = tpu.reciprocal %97 {approx = true} : vector<8x32xf32> -> vector<8x32xf32>
    %99 = arith.mulf %89, %91 : vector<8x32xf32>
    %100 = math.tanh %99 : vector<8x32xf32>
    %101 = arith.mulf %98, %100 : vector<8x32xf32>
    %102 = arith.truncf %55 : vector<8x32xf32> to vector<8x32xbf16>
    %cst_24 = arith.constant dense<0.000000e+00> : vector<8x128xf32>
    %103 = tpu.matmul %102, %11, %cst_24 {dimension_numbers = #tpu.dot_dimension_numbers<[1], [0], [0], [1], [0, 0, 1, 1], [], []>} : vector<8x32xbf16>, vector<32x128xbf16>, vector<8x128xf32> -> vector<8x128xf32>
    %104 = vector.broadcast %7 : vector<1x128xf32> to vector<8x128xf32>
    %105 = arith.addf %103, %104 : vector<8x128xf32>
    %106 = arith.truncf %78 : vector<8x32xf32> to vector<8x32xbf16>
    %cst_25 = arith.constant dense<0.000000e+00> : vector<8x128xf32>
    %107 = tpu.matmul %106, %12, %cst_25 {dimension_numbers = #tpu.dot_dimension_numbers<[1], [0], [0], [1], [0, 0, 1, 1], [], []>} : vector<8x32xbf16>, vector<32x128xbf16>, vector<8x128xf32> -> vector<8x128xf32>
    %108 = arith.addf %105, %107 : vector<8x128xf32>
    %109 = vector.extract_strided_slice %108 {offsets = [0, 0], sizes = [8, 32], strides = [1, 1]} : vector<8x128xf32> to vector<8x32xf32>
    %cst_26 = arith.constant 0.000000e+00 : f32
    %110 = vector.broadcast %cst_26 : f32 to vector<8x32xf32>
    %111 = arith.subf %110, %109 : vector<8x32xf32>
    %112 = math.exp %111 : vector<8x32xf32>
    %cst_27 = arith.constant 1.000000e+00 : f32
    %113 = vector.broadcast %cst_27 : f32 to vector<8x32xf32>
    %114 = arith.addf %113, %112 : vector<8x32xf32>
    %115 = tpu.reciprocal %114 {approx = true} : vector<8x32xf32> -> vector<8x32xf32>
    %116 = vector.extract_strided_slice %108 {offsets = [0, 32], sizes = [8, 32], strides = [1, 1]} : vector<8x128xf32> to vector<8x32xf32>
    %cst_28 = arith.constant 0.000000e+00 : f32
    %117 = vector.broadcast %cst_28 : f32 to vector<8x32xf32>
    %118 = arith.subf %117, %116 : vector<8x32xf32>
    %119 = math.exp %118 : vector<8x32xf32>
    %cst_29 = arith.constant 1.000000e+00 : f32
    %120 = vector.broadcast %cst_29 : f32 to vector<8x32xf32>
    %121 = arith.addf %120, %119 : vector<8x32xf32>
    %122 = tpu.reciprocal %121 {approx = true} : vector<8x32xf32> -> vector<8x32xf32>
    %123 = vector.extract_strided_slice %108 {offsets = [0, 64], sizes = [8, 32], strides = [1, 1]} : vector<8x128xf32> to vector<8x32xf32>
    %124 = math.tanh %123 : vector<8x32xf32>
    %125 = vector.extract_strided_slice %108 {offsets = [0, 96], sizes = [8, 32], strides = [1, 1]} : vector<8x128xf32> to vector<8x32xf32>
    %cst_30 = arith.constant 0.000000e+00 : f32
    %126 = vector.broadcast %cst_30 : f32 to vector<8x32xf32>
    %127 = arith.subf %126, %125 : vector<8x32xf32>
    %128 = math.exp %127 : vector<8x32xf32>
    %cst_31 = arith.constant 1.000000e+00 : f32
    %129 = vector.broadcast %cst_31 : f32 to vector<8x32xf32>
    %130 = arith.addf %129, %128 : vector<8x32xf32>
    %131 = tpu.reciprocal %130 {approx = true} : vector<8x32xf32> -> vector<8x32xf32>
    %132 = arith.mulf %122, %76 : vector<8x32xf32>
    %133 = arith.mulf %115, %124 : vector<8x32xf32>
    %134 = arith.addf %132, %133 : vector<8x32xf32>
    %135 = math.tanh %134 : vector<8x32xf32>
    %136 = arith.mulf %131, %135 : vector<8x32xf32>
    %137 = arith.truncf %136 : vector<8x32xf32> to vector<8x32xbf16>
    %cst_32 = arith.constant dense<0.000000e+00> : vector<8x128xf32>
    %138 = tpu.matmul %137, %13, %cst_32 {dimension_numbers = #tpu.dot_dimension_numbers<[1], [0], [0], [1], [0, 0, 1, 1], [], []>} : vector<8x32xbf16>, vector<32x128xbf16>, vector<8x128xf32> -> vector<8x128xf32>
    %139 = vector.broadcast %8 : vector<1x128xf32> to vector<8x128xf32>
    %140 = arith.addf %138, %139 : vector<8x128xf32>
    %141 = arith.truncf %101 : vector<8x32xf32> to vector<8x32xbf16>
    %cst_33 = arith.constant dense<0.000000e+00> : vector<8x128xf32>
    %142 = tpu.matmul %141, %14, %cst_33 {dimension_numbers = #tpu.dot_dimension_numbers<[1], [0], [0], [1], [0, 0, 1, 1], [], []>} : vector<8x32xbf16>, vector<32x128xbf16>, vector<8x128xf32> -> vector<8x128xf32>
    %143 = arith.addf %140, %142 : vector<8x128xf32>
    %144 = vector.extract_strided_slice %143 {offsets = [0, 0], sizes = [8, 32], strides = [1, 1]} : vector<8x128xf32> to vector<8x32xf32>
    %cst_34 = arith.constant 0.000000e+00 : f32
    %145 = vector.broadcast %cst_34 : f32 to vector<8x32xf32>
    %146 = arith.subf %145, %144 : vector<8x32xf32>
    %147 = math.exp %146 : vector<8x32xf32>
    %cst_35 = arith.constant 1.000000e+00 : f32
    %148 = vector.broadcast %cst_35 : f32 to vector<8x32xf32>
    %149 = arith.addf %148, %147 : vector<8x32xf32>
    %150 = tpu.reciprocal %149 {approx = true} : vector<8x32xf32> -> vector<8x32xf32>
    %151 = vector.extract_strided_slice %143 {offsets = [0, 32], sizes = [8, 32], strides = [1, 1]} : vector<8x128xf32> to vector<8x32xf32>
    %cst_36 = arith.constant 0.000000e+00 : f32
    %152 = vector.broadcast %cst_36 : f32 to vector<8x32xf32>
    %153 = arith.subf %152, %151 : vector<8x32xf32>
    %154 = math.exp %153 : vector<8x32xf32>
    %cst_37 = arith.constant 1.000000e+00 : f32
    %155 = vector.broadcast %cst_37 : f32 to vector<8x32xf32>
    %156 = arith.addf %155, %154 : vector<8x32xf32>
    %157 = tpu.reciprocal %156 {approx = true} : vector<8x32xf32> -> vector<8x32xf32>
    %158 = vector.extract_strided_slice %143 {offsets = [0, 64], sizes = [8, 32], strides = [1, 1]} : vector<8x128xf32> to vector<8x32xf32>
    %159 = math.tanh %158 : vector<8x32xf32>
    %160 = vector.extract_strided_slice %143 {offsets = [0, 96], sizes = [8, 32], strides = [1, 1]} : vector<8x128xf32> to vector<8x32xf32>
    %cst_38 = arith.constant 0.000000e+00 : f32
    %161 = vector.broadcast %cst_38 : f32 to vector<8x32xf32>
    %162 = arith.subf %161, %160 : vector<8x32xf32>
    %163 = math.exp %162 : vector<8x32xf32>
    %cst_39 = arith.constant 1.000000e+00 : f32
    %164 = vector.broadcast %cst_39 : f32 to vector<8x32xf32>
    %165 = arith.addf %164, %163 : vector<8x32xf32>
    %166 = tpu.reciprocal %165 {approx = true} : vector<8x32xf32> -> vector<8x32xf32>
    %167 = arith.mulf %157, %99 : vector<8x32xf32>
    %168 = arith.mulf %150, %159 : vector<8x32xf32>
    %169 = arith.addf %167, %168 : vector<8x32xf32>
    %170 = math.tanh %169 : vector<8x32xf32>
    %171 = arith.mulf %166, %170 : vector<8x32xf32>
    %172 = tpu.concatenate %101, %171 in 0 : vector<8x32xf32>, vector<8x32xf32> -> vector<16x32xf32>
    %cst_40 = arith.constant dense<0.000000e+00> : vector<16x128xf32>
    %173 = tpu.matmul %172, %2, %cst_40 {dimension_numbers = #tpu.dot_dimension_numbers<[1], [0], [0], [1], [0, 0, 1, 1], [], []>} : vector<16x32xf32>, vector<32x128xf32>, vector<16x128xf32> -> vector<16x128xf32>
    %174 = vector.broadcast %9 : vector<1x128xf32> to vector<16x128xf32>
    %175 = arith.addf %173, %174 : vector<16x128xf32>
    %c0_41 = arith.constant 0 : index
    %c0_42 = arith.constant 0 : index
    %176 = vector.load %arg5[%c0_41, %c0_42] : memref<16x128xf32, #tpu.memory_space<vmem>>, vector<16x128xf32>
    tpu.vector_store %arg5[%c0_41, %c0_42], %175 {strides = array<i32>} : memref<16x128xf32, #tpu.memory_space<vmem>>, vector<16x128xf32>,
    return
  }
  func.func @transform_0(%arg0: i32) -> (i32, i32) {
    %c0_i32 = arith.constant 0 : i32
    %c0_i32_0 = arith.constant 0 : i32
    %c0_i32_1 = arith.constant 0 : i32
    return %c0_i32, %c0_i32_0 : i32, i32
  }
  func.func @transform_1(%arg0: i32) -> (i32, i32) {
    %c0_i32 = arith.constant 0 : i32
    %c0_i32_0 = arith.constant 0 : i32
    %c0_i32_1 = arith.constant 0 : i32
    return %c0_i32, %c0_i32_0 : i32, i32
  }
  func.func @transform_2(%arg0: i32) -> (i32, i32) {
    %c0_i32 = arith.constant 0 : i32
    %c0_i32_0 = arith.constant 0 : i32
    %c0_i32_1 = arith.constant 0 : i32
    return %c0_i32, %c0_i32_0 : i32, i32
  }
  func.func @transform_3(%arg0: i32) -> (i32, i32) {
    %c0_i32 = arith.constant 0 : i32
    %c0_i32_0 = arith.constant 0 : i32
    %c0_i32_1 = arith.constant 0 : i32
    return %c0_i32, %c0_i32_0 : i32, i32
  }
  func.func @transform_4(%arg0: i32) -> (i32, i32) {
    %c0_i32 = arith.constant 0 : i32
    %c0_i32_0 = arith.constant 0 : i32
    %c0_i32_1 = arith.constant 0 : i32
    return %c0_i32, %c0_i32_0 : i32, i32
  }
}

</mosaic_0001>

<bundles_post_ra>
// kernel: lstm_tcm_forward.1
= control target key start
LH: loop header
LB: loop body
LE: loop exit
PB: predicated region body
PF: predicated region fallthrough
CT: control target
= control target key end

     0   :  { %9 = vsyncpa [#allocation3], 0  ;;  %s1224_s0 = inlined_call_operand.hbm [shape: f32[16,64], index: 0, kind: input, shape index: {}]   ;;  %s1225_s1 = inlined_call_operand.hbm [shape: f32[96,128], index: 1, kind: input, shape index: {}]   ;;  %s1226_s2 = inlined_call_operand.hbm [shape: bf16[128,128], index: 2, kind: input, shape index: {}]   ;;  %s1227_s3 = inlined_call_operand.hbm [shape: f32[8,128], index: 3, kind: input, shape index: {}]   ;;  %s1228_s4 = inlined_call_operand.vmem [shape: f32[16,128], index: 4, kind: output, shape index: {}]  }
   0x1   :  { %10 = vsyncpa [#allocation5], 0 }
   0x2   :  { %11 = vsyncpa [#allocation8], 0  ;;  %s1053_s15 = smov [#allocation4]   ;;  %s1054_s17 = smov [#allocation2]  }
   0x3   :  { %s29_s16 = sshll.u32 %s1053_s15, 4  ;;  %s17_s18 = sshll.u32 %s1054_s17, 4  ;;  %s30_s16 = int_to_ptr.vmem [resolvable:$true] %s29_s16  ;;  %s1090_s18 = int_to_ptr.vmem [resolvable:$true] %s17_s18 }
   0x4   :  { %s959_s21 = scalar_lea.hbm %s1225_s1, 1536 }
   0x5   :  { %p960_p0 = scmp.ne.s32.totalorder %s1225_s1, %s959_s21  ;;  %p963_p1 = scmp.lt.u32.totalorder %s959_s21, %s1225_s1 }
   0x7   :  { %p965_p2 = pnand %p963_p1, %p960_p0 }
   0x9   :  { %968 = shalt.err (!%p965_p2)
}
   0xa   :  { %s969_s26 = scalar_lea.vmem %s30_s16, 1536  ;;  %p974_p4 = scmp.lt.s32.totalorder %s30_s16, %s30_s16 }
   0xb   :  { %p970_p3 = scmp.ne.s32.totalorder %s30_s16, %s969_s26  ;;  %p975_p5 = scmp.lt.s32.totalorder %s969_s26, %s969_s26 }
   0xd   :  { %p976_p6 = por %p975_p5, %p974_p4 }
   0xf   :  { %p977_p7 = pnand %p976_p6, %p970_p3 }
  0x11   :  { %980 = shalt.err (!%p977_p7)
}
  0x12   :  { %s1055_s27 = smov 128   ;;  %s1056_s28 = smov 8  }
  0x13   :  { %35 = dma.hbm_to_vmem [thread:$0]  %s1225_s1, 1536, %s30_s16, [#allocation5], %s1055_s27, %s1055_s27, %s1056_s28  }
  0x14   :  { %s981_s7 = scalar_lea.hbm %s1224_s0, 256 }
  0x15   :  { %p982_p8 = scmp.ne.s32.totalorder %s1224_s0, %s981_s7  ;;  %p985_p9 = scmp.lt.u32.totalorder %s981_s7, %s1224_s0 }
  0x17   :  { %p987_p10 = pnand %p985_p9, %p982_p8 }
  0x19   :  { %990 = shalt.err (!%p987_p10)
}
  0x1a   :  { %s991_s12 = scalar_lea.vmem %s1090_s18, 256  ;;  %p996_p12 = scmp.lt.s32.totalorder %s1090_s18, %s1090_s18 }
  0x1b   :  { %p992_p11 = scmp.ne.s32.totalorder %s1090_s18, %s991_s12  ;;  %p997_p13 = scmp.lt.s32.totalorder %s991_s12, %s991_s12 }
  0x1d   :  { %p998_p0 = por %p997_p13, %p996_p12 }
  0x1f   :  { %p999_p1 = pnand %p998_p0, %p992_p11 }
  0x21   :  { %1002 = shalt.err (!%p999_p1)
}
  0x22   :  { %23 = dma.hbm_to_vmem [thread:$0]  %s1224_s0, 256, %s1090_s18, [#allocation3], %s1055_s27, %s1055_s27, %s1056_s28  }
  0x23   :  { %s1057_s14 = smov [#allocation6]   ;;  %s1003_s19 = scalar_lea.hbm %s1226_s2, 1024 }
  0x24   :  { %s41_s15 = sshll.u32 %s1057_s14, 4  ;;  %p1004_p2 = scmp.ne.s32.totalorder %s1226_s2, %s1003_s19  ;;  %s42_s15 = int_to_ptr.vmem [resolvable:$true] %s41_s15 }
  0x25   :  { %p1007_p3 = scmp.lt.u32.totalorder %s1003_s19, %s1226_s2 }
  0x27   :  { %p1009_p4 = pnand %p1007_p3, %p1004_p2 }
  0x29   :  { %1012 = shalt.err (!%p1009_p4)
}
  0x2a   :  { %s1013_s24 = scalar_lea.vmem %s42_s15, 1024  ;;  %p1018_p6 = scmp.lt.s32.totalorder %s42_s15, %s42_s15 }
  0x2b   :  { %p1014_p5 = scmp.ne.s32.totalorder %s42_s15, %s1013_s24  ;;  %p1019_p7 = scmp.lt.s32.totalorder %s1013_s24, %s1013_s24 }
  0x2d   :  { %p1020_p8 = por %p1019_p7, %p1018_p6 }
  0x2f   :  { %p1021_p9 = pnand %p1020_p8, %p1014_p5 }
  0x31   :  { %1024 = shalt.err (!%p1021_p9)
}
  0x32   :  { %s1058_s0 = smov 64   ;;  %s1059_s18 = smov 4  }
  0x33   :  { %47 = dma.hbm_to_vmem [thread:$0]  %s1226_s2, 1024, %s42_s15, [#allocation5], %s1058_s0, %s1058_s0, %s1059_s18  }
  0x34   :  { %s1060_s27 = smov [#allocation7]   ;;  %s1025_s5 = scalar_lea.hbm %s1227_s3, 128 }
  0x35   :  { %s54_s28 = sshll.u32 %s1060_s27, 4  ;;  %p1026_p10 = scmp.ne.s32.totalorder %s1227_s3, %s1025_s5  ;;  %s55_s28 = int_to_ptr.vmem [resolvable:$true] %s54_s28 }
  0x36   :  { %p1029_p11 = scmp.lt.u32.totalorder %s1025_s5, %s1227_s3 }
  0x38   :  { %p1031_p12 = pnand %p1029_p11, %p1026_p10 }
  0x3a   :  { %1034 = shalt.err (!%p1031_p12)
}
  0x3b   :  { %s1035_s10 = scalar_lea.vmem %s55_s28, 128  ;;  %p1040_p0 = scmp.lt.s32.totalorder %s55_s28, %s55_s28 }
  0x3c   :  { %p1036_p13 = scmp.ne.s32.totalorder %s55_s28, %s1035_s10  ;;  %p1041_p1 = scmp.lt.s32.totalorder %s1035_s10, %s1035_s10 }
  0x3e   :  { %p1042_p2 = por %p1041_p1, %p1040_p0 }
  0x40   :  { %p1043_p3 = pnand %p1042_p2, %p1036_p13 }
  0x42   :  { %1046 = shalt.err (!%p1043_p3)
}
  0x43   :  { %57 = dma.hbm_to_vmem [thread:$0]  %s1227_s3, 128, %s55_s28, [#allocation8]  }
  0x44   :  { %1047 = dma.done.wait [#allocation3], 256  }
  0x45   :  { %1048 = vsyncadd [#allocation3], 4294967040 }
  0x46   :  { %1049 = dma.done.wait [#allocation5], 2560  }
  0x47   :  { %1050 = vsyncadd [#allocation5], 4294964736 }
  0x48   :  { %1051 = dma.done.wait [#allocation8], 128  }
  0x49   :  { %1052 = vsyncadd [#allocation8], 4294967168  ;;  %v71_v0 = vld [vmem:[#allocation4] sm:$0xff]  ;;  %v72_v1 = vld [vmem:[#allocation4 + $0x8] sm:$0xff]  ;;  %vm106_vm0 = vcmask 523264   ;;  %v1061_v15 = vmov 0.0   ;;  %v102_v17 = vlaneseq }
  0x4a   :  { %v73_v2 = vld [vmem:[#allocation4 + $0x10] sm:$0xff]  ;;  %v867_v3 = vpack.c.bf16 %v72_v1, %v71_v0  ;;  %v74_v4 = vld [vmem:[#allocation4 + $0x18] sm:$0xff]  ;;  %v75_v6 = vld [vmem:[#allocation4 + $0x20] sm:$0xff]  ;;  %808 = vmatprep.subr.bf16.mxu1 %v1061_v15  ;;  %vm1062_vm1 = vmmov 0   ;;  %vm238_vm4 = vcmask 261120   ;;  %s1063_s3 = smov 96  }
  0x4b   :  { %v871_v5 = vpack.c.bf16 %v74_v4, %v73_v2  ;;  %v76_v7 = vld [vmem:[#allocation4 + $0x28] sm:$0xff]  ;;  %v100_v8 = vld [vmem:[#allocation2] sm:$0xff]  ;;  %v78_v10 = vld [vmem:[#allocation4 + $0x38] sm:$0xff]  ;;  %812 = vmatprep.mubr.msk.bf16.mxu1 %vm1062_vm1, %v1061_v15  ;;  %v1159_v18 = vshrl.u32 %v102_v17, 7  ;;  %s1064_s12 = smov 32  }
  0x4c   :  { %868 = vmatprep.subr.bf16.mxu0 %v867_v3  ;;  %805 = vmatprep.mubr.msk.f32.mxu0 %vm106_vm0, %v100_v8  ;;  %v77_v9 = vld [vmem:[#allocation4 + $0x30] sm:$0xff]  ;;  %v875_v11 = vpack.c.bf16 %v76_v7, %v75_v6  ;;  %v101_v13 = vld [vmem:[#allocation2 + $0x8] sm:$0xff]  ;;  %v913_v14 = vld [vmem:[#allocation6] sm:$0xff]  }
  0x4d   :  { %870 = vmatpush3.bf16.msra.mxu0 %v867_v3  ;;  %v879_v12 = vpack.c.bf16 %v78_v10, %v77_v9  ;;  %809 = vmatpush3.bf16.msra.mxu1 %v913_v14  ;;  %v914_v16 = vld [vmem:[#allocation6 + $0x8] sm:$0xff]   ;;  %v104_v19 = vsub.s32 0, %v1159_v18  ;;  %v1162_v20 = vld [vmem:[#allocation7] sm:$0xff]  ;;  %v200_v35 = vsub.s32 1, %v1159_v18  ;;  %v206_v37 = vsub.s32 2, %v1159_v18  ;;  %v915_v6 = vld [vmem:[#allocation6 + $0x10] sm:$0xff]  }
  0x4e   :  { %872 = vmatprep.subr.bf16.mxu0 %v871_v5  ;;  %810 = vmatprep.subr.bf16.mxu1 %v1061_v15  ;;  %v224_v55 = vsub.s32 3, %v1159_v18  ;;  %v916_v7 = vld [vmem:[#allocation6 + $0x20] sm:$0xff]   ;;  %v917_v8 = vld [vmem:[#allocation6 + $0x18] sm:$0xff]   ;;  %v918_v9 = vld [vmem:[#allocation6 + $0x28] sm:$0xff]  }
  0x4f   :  { %v105_v21 = vrot.slane %v1162_v20, %v104_v19  ;;  %v201_v36 = vrot.slane %v1162_v20, %v200_v35  ;;  %v207_v40 = vrot.slane %v1162_v20, %v206_v37 }
  0x50   :  { %v225_v56 = vrot.slane %v1162_v20, %v224_v55 }
  0x51   :  { %874 = vmatpush3.bf16.msra.mxu0 %v871_v5  ;;  %811 = vmatpush3.bf16.msra.mxu1 %v914_v16 }
  0x52   :  { %876 = vmatprep.subr.bf16.mxu0 %v875_v11  ;;  %816 = vmatprep.subr.bf16.mxu1 %v1061_v15 }
  0x55   :  { %878 = vmatpush3.bf16.msra.mxu0 %v875_v11 }
  0x56   :  { %880 = vmatprep.subr.bf16.mxu0 %v879_v12 }
  0x59   :  { %882 = vmatpush3.bf16.msra.mxu0 %v879_v12 }
  0x5a   :  { %824 = vmatprep.subr.bf16.mxu0 %v1061_v15 }
  0x5c   :  { %806 = vmatmul.mubr.msk.f32.vlgmr.msra.gmra.mrb[0].mxu0 %vm106_vm0, %v101_v13 }
  0x5d   :  { %825 = vmatpush3.bf16.msra.mxu0 %v913_v14  ;;  %828 = vmatprep.mubr.msk.bf16.mxu0 %vm1062_vm1, %v1061_v15 }
  0x5e   :  { %826 = vmatprep.subr.bf16.mxu0 %v1061_v15 }
  0x61   :  { %827 = vmatpush3.bf16.msra.mxu0 %v914_v16  ;;  %v302_v16 = vsub.s32 4, %v1159_v18 }
  0x62   :  { %832 = vmatprep.subr.bf16.mxu0 %v1061_v15 }
  0x63   :  { %v1192_v17 = vrot.slane %v1162_v20, %v302_v16  ;;  %v80_v16 = vld [vmem:[#allocation4 + $0x48] sm:$0xff] }
 0x12f   :  { %v807_v22 = vpop.f32.mrb[0].mxu0 }
 0x130   :  { %v185_v23 = vadd.f32 %v807_v22, %v105_v21  ;;  %v179_v24 = vpop.f32.mrb[1].mxu0 }
 0x131   :  { %v180_v25 = vadd.f32 %v179_v24, %v105_v21 }
 0x133   :  { %v188_v26 = vadd.f32 %v185_v23, %v180_v25 }
 0x135   :  { %v189_v27 = vmul.f32 0.5, %v188_v26 }
 0x137   :  { %v190_v28 = vsub.f32 %v180_v25, %v189_v27  ;;  %v192_v29 = vsub.f32 %v185_v23, %v189_v27 }
 0x139   :  { %v191_v30 = vmul.f32 %v190_v28, %v190_v28  ;;  %v193_v31 = vmul.f32 %v192_v29, %v192_v29 }
 0x13b   :  { %v194_v32 = vadd.f32 %v193_v31, %v191_v30 }
 0x13d   :  { %v195_v33 = vmul.f32 0.5, %v194_v32 }
 0x13f   :  { %v196_v34 = vadd.f32 1e-05, %v195_v33 }
 0x141   :  { %921 = vrsqrt.f32 %v196_v34 }
 0x14b   :  { %v922_v38 = vpop.eup %921 }
 0x14c   :  { %v202_v39 = vmul.f32 %v922_v38, %v201_v36 }
 0x14e   :  { %v203_v41 = vmul.f32 %v202_v39, %v190_v28  ;;  %v214_v42 = vmul.f32 %v202_v39, %v192_v29 }
 0x150   :  { %v208_v43 = vadd.f32 %v207_v40, %v203_v41  ;;  %v215_v44 = vadd.f32 %v214_v42, %v207_v40 }
 0x152   :  { %v210_v45 = vmul.f32 1.442695, %v208_v43  ;;  %v217_v46 = vmul.f32 1.442695, %v215_v44  ;;  %vm209_vm2 = vcmp.gt.f32.partialorder %v208_v43, 0.0  ;;  %vm216_vm3 = vcmp.gt.f32.partialorder %v215_v44, 0.0 }
 0x154   :  { %923 = vpow2.f32 %v210_v45 }
 0x155   :  { %925 = vpow2.f32 %v217_v46 }
 0x15e   :  { %v924_v47 = vpop.eup %923 }
 0x15f   :  { %v926_v48 = vpop.eup %925  ;;  %v737_v49 = vadd.f32 -1.0, %v924_v47 }
 0x160   :  { %v738_v50 = vadd.f32 -1.0, %v926_v48 }
 0x161   :  { %v213_v51 = vsel %vm209_vm2, %v208_v43, %v737_v49 }
 0x162   :  { %v221_v52 = vpack.c.bf16 %v213_v51, %v213_v51  ;;  %v220_v53 = vsel %vm216_vm3, %v215_v44, %v738_v50 }
 0x163   :  { %v379_v54 = vpack.c.bf16 %v220_v53, %v220_v53 }
 0x164   :  { %813 = vmatmul.mubr.msk.bf16.vlgmr.msra.gmra.mrb[0].mxu1 %vm238_vm4, %v221_v52 }
 0x165   :  { %829 = vmatmul.mubr.msk.bf16.vlgmr.msra.gmra.mrb[4].mxu0 %vm238_vm4, %v379_v54  ;;  %820 = vmatprep.mubr.msk.bf16.mxu1 %vm1062_vm1, %v1061_v15 }
 0x166   :  { %836 = vmatprep.mubr.msk.bf16.mxu0 %vm1062_vm1, %v1061_v15  ;;  %833 = vmatpush3.bf16.msra.mxu0 %v915_v6 }
 0x167   :  { %817 = vmatpush3.bf16.msra.mxu1 %v916_v7  ;;  %834 = vmatprep.subr.bf16.mxu0 %v1061_v15 }
 0x168   :  { %818 = vmatprep.subr.bf16.mxu1 %v1061_v15 }
 0x16a   :  { %835 = vmatpush3.bf16.msra.mxu0 %v917_v8 }
 0x16b   :  { %819 = vmatpush3.bf16.msra.mxu1 %v918_v9 }
 0x16c   :  { %840 = vmatprep.subr.bf16.mxu1 %v1061_v15 }
 0x237   :  { %v276_v57 = vpop.f32.mrb[0].mxu1 }
 0x238   :  { %v277_v58 = vadd.f32 %v276_v57, %v225_v56  ;;  %v814_v59 = vpop.f32.mrb[1].mxu1 }
 0x239   :  { %v279_v60 = vpop.f32.mrb[2].mxu1 }
 0x23a   :  { %v815_v61 = vpop.f32.mrb[3].mxu1  ;;  %927 = vtanh.f32 %v277_v58  ;;  %v282_v63 = vsub.f32 0.0, %v277_v58  ;;  %v919_v58 = vld [vmem:[#allocation6 + $0x30] sm:$0xff]   ;;  %v920_v60 = vld [vmem:[#allocation6 + $0x38] sm:$0xff]  }
 0x23c   :  { %v283_v0 = vmul.f32 1.442695, %v282_v63 }
 0x23e   :  { %929 = vpow2.f32 %v283_v0 }
 0x244   :  { %v928_v62 = vpop.eup %927 }
 0x245   :  { %289 = vrot.lane.b32.xlu0 %v928_v62, %s1058_s0 }
 0x248   :  { %v930_v1 = vpop.eup %929 }
 0x249   :  { %v285_v2 = vadd.f32 1.0, %v930_v1 }
 0x24b   :  { %931 = vrcp.f32 %v285_v2 }
 0x255   :  { %v932_v3 = vpop.eup %931 }
 0x2b7   :  { %v290_v4 = vpop.permute.xlu0 %289 }
 0x2b8   :  { %v292_v5 = vmul.f32 %v932_v3, %v290_v4 }
 0x2ba   :  { %933 = vtanh.f32 %v292_v5 }
 0x2c4   :  { %v934_v10 = vpop.eup %933 }
 0x2c5   :  { %295 = vrot.lane.b32.xlu0 %v934_v10, %s1063_s3 }
 0x2c9   :  { %483 = vrot.lane.b32.xlu0 %v292_v5, %s1064_s12 }
 0x337   :  { %v296_v11 = vpop.permute.xlu0 %295 }
 0x338   :  { %v298_v12 = vmul.f32 %v932_v3, %v296_v11 }
 0x33a   :  { %v299_v13 = vpack.c.bf16 %v298_v12, %v298_v12 }
 0x33b   :  { %v484_v40 = vpop.permute.xlu0 %483 }
 0x33c   :  { %305 = vrot.lane.b32.xlu1 %v299_v13, %s1064_s12 }
 0x3ae   :  { %v306_v14 = vpop.permute.xlu1 %305 }
 0x3af   :  { %821 = vmatmul.mubr.msk.bf16.vlgmr.msra.gmra.mrb[4].mxu1 %vm238_vm4, %v306_v14  ;;  %837 = vmatmul.mubr.msk.bf16.vlgmr.msra.gmra.mrb[4].mxu0 %vm238_vm4, %v306_v14  ;;  %v79_v14 = vld [vmem:[#allocation4 + $0x40] sm:$0xff] }
 0x3b0   :  { %841 = vmatpush3.bf16.msra.mxu1 %v916_v7  ;;  %844 = vmatprep.mubr.msk.bf16.mxu1 %vm1062_vm1, %v1061_v15 }
 0x3b1   :  { %842 = vmatprep.subr.bf16.mxu1 %v1061_v15 }
 0x3b4   :  { %843 = vmatpush3.bf16.msra.mxu1 %v918_v9 }
 0x3b5   :  { %848 = vmatprep.subr.bf16.mxu1 %v1061_v15 }
 0x482   :  { %v356_v19 = vpop.f32.mrb[4].mxu1  ;;  %v469_v21 = vpop.f32.mrb[4].mxu0 }
 0x483   :  { %v357_v22 = vadd.f32 %v356_v19, %v1192_v17  ;;  %v891_v23 = vadd.f32 %v469_v21, %v225_v56  ;;  %v822_v24 = vpop.f32.mrb[5].mxu1  ;;  %v838_v25 = vpop.f32.mrb[5].mxu0  ;;  %v883_v21 = vpack.c.bf16 %v80_v16, %v79_v14 }
 0x484   :  { %v359_v26 = vpop.f32.mrb[6].mxu1  ;;  %v472_v27 = vpop.f32.mrb[6].mxu0 }
 0x485   :  { %935 = vtanh.f32 %v357_v22  ;;  %v823_v28 = vpop.f32.mrb[7].mxu1  ;;  %v839_v29 = vpop.f32.mrb[7].mxu0  ;;  %v362_v32 = vsub.f32 0.0, %v357_v22  ;;  %v476_v33 = vsub.f32 0.0, %v891_v23  ;;  %v82_v22 = vld [vmem:[#allocation4 + $0x58] sm:$0xff]  ;;  %884 = vmatprep.subr.bf16.mxu0 %v883_v21 }
 0x486   :  { %937 = vtanh.f32 %v891_v23  ;;  %886 = vmatpush3.bf16.msra.mxu0 %v883_v21  ;;  %v639_v28 = vsub.s32 5, %v1159_v18 }
 0x487   :  { %v363_v34 = vmul.f32 1.442695, %v362_v32  ;;  %v477_v35 = vmul.f32 1.442695, %v476_v33 }
 0x488   :  { %v640_v29 = vrot.slane %v1162_v20, %v639_v28 }
 0x489   :  { %939 = vpow2.f32 %v363_v34 }
 0x48a   :  { %941 = vpow2.f32 %v477_v35 }
 0x48f   :  { %v936_v30 = vpop.eup %935 }
 0x490   :  { %v938_v31 = vpop.eup %937  ;;  %369 = vrot.lane.b32.xlu0 %v936_v30, %s1058_s0 }
 0x491   :  { %488 = vrot.lane.b32.xlu1 %v938_v31, %s1058_s0 }
 0x493   :  { %v940_v36 = vpop.eup %939 }
 0x494   :  { %v942_v37 = vpop.eup %941  ;;  %v365_v38 = vadd.f32 1.0, %v940_v36 }
 0x495   :  { %v479_v39 = vadd.f32 1.0, %v942_v37 }
 0x496   :  { %943 = vrcp.f32 %v365_v38 }
 0x497   :  { %945 = vrcp.f32 %v479_v39 }
 0x4a0   :  { %v944_v41 = vpop.eup %943 }
 0x4a1   :  { %v946_v43 = vpop.eup %945 }
 0x4a2   :  { %v486_v48 = vmul.f32 %v946_v43, %v484_v40 }
 0x502   :  { %v370_v42 = vpop.permute.xlu0 %369 }
 0x503   :  { %v489_v44 = vpop.permute.xlu1 %488  ;;  %v372_v45 = vmul.f32 %v944_v41, %v370_v42 }
 0x504   :  { %v491_v46 = vmul.f32 %v946_v43, %v489_v44 }
 0x505   :  { %947 = vtanh.f32 %v372_v45 }
 0x506   :  { %493 = vrot.lane.b32.xlu1 %v491_v46, %s1064_s12 }
 0x50f   :  { %v948_v47 = vpop.eup %947 }
 0x510   :  { %375 = vrot.lane.b32.xlu0 %v948_v47, %s1063_s3 }
 0x578   :  { %v494_v49 = vpop.permute.xlu1 %493 }
 0x579   :  { %v496_v50 = vadd.f32 %v494_v49, %v486_v48 }
 0x57b   :  { %949 = vtanh.f32 %v496_v50 }
 0x582   :  { %v376_v51 = vpop.permute.xlu0 %375 }
 0x583   :  { %v378_v52 = vmul.f32 %v944_v41, %v376_v51 }
 0x585   :  { %v950_v53 = vpop.eup %949  ;;  %v550_v54 = vpack.c.bf16 %v378_v52, %v378_v52 }
 0x586   :  { %499 = vrot.lane.b32.xlu1 %v950_v53, %s1058_s0 }
 0x587   :  { %552 = vrot.lane.b32.xlu0 %v550_v54, %s1064_s12 }
 0x58b   :  { %617 = vrot.lane.b32.xlu0 %v372_v45, %s1064_s12 }
 0x5f8   :  { %v500_v55 = vpop.permute.xlu1 %499 }
 0x5f9   :  { %v502_v56 = vmul.f32 %v946_v43, %v500_v55  ;;  %v553_v61 = vpop.permute.xlu0 %552 }
 0x5fb   :  { %v503_v57 = vpack.c.bf16 %v502_v56, %v502_v56 }
 0x5fd   :  { %505 = vrot.lane.b32.xlu1 %v503_v57, %s1064_s12  ;;  %v618_v10 = vpop.permute.xlu0 %617 }
 0x66f   :  { %v506_v59 = vpop.permute.xlu1 %505 }
 0x670   :  { %845 = vmatmul.mubr.msk.bf16.vlgmr.msra.gmra.mrb[8].mxu1 %vm238_vm4, %v506_v59 }
 0x671   :  { %849 = vmatpush3.bf16.msra.mxu1 %v919_v58  ;;  %852 = vmatprep.mubr.msk.bf16.mxu1 %vm1062_vm1, %v1061_v15 }
 0x672   :  { %850 = vmatprep.subr.bf16.mxu1 %v1061_v15 }
 0x675   :  { %851 = vmatpush3.bf16.msra.mxu1 %v920_v60 }
 0x67c   :  { %853 = vmatmul.mubr.msk.bf16.vlgmr.msra.gmra.mrb[8].mxu1 %vm238_vm4, %v553_v61 }
 0x74f   :  { %v603_v62 = vpop.f32.mrb[8].mxu1 }
 0x750   :  { %v892_v63 = vadd.f32 %v603_v62, %v1192_v17  ;;  %v854_v0 = vpop.f32.mrb[9].mxu1  ;;  %v81_v17 = vld [vmem:[#allocation4 + $0x50] sm:$0xff] }
 0x751   :  { %v606_v1 = vpop.f32.mrb[10].mxu1  ;;  %v887_v23 = vpack.c.bf16 %v82_v22, %v81_v17 }
 0x752   :  { %951 = vtanh.f32 %v892_v63  ;;  %v855_v2 = vpop.f32.mrb[11].mxu1  ;;  %v610_v4 = vsub.f32 0.0, %v892_v63 }
 0x753   :  { %888 = vmatprep.subr.bf16.mxu0 %v887_v23 }
 0x754   :  { %v611_v5 = vmul.f32 1.442695, %v610_v4  ;;  %890 = vmatpush3.bf16.msra.mxu0 %v887_v23 }
 0x756   :  { %953 = vpow2.f32 %v611_v5 }
 0x75c   :  { %v952_v3 = vpop.eup %951 }
 0x75d   :  { %622 = vrot.lane.b32.xlu1 %v952_v3, %s1058_s0 }
 0x760   :  { %v954_v6 = vpop.eup %953 }
 0x761   :  { %v613_v7 = vadd.f32 1.0, %v954_v6 }
 0x763   :  { %955 = vrcp.f32 %v613_v7 }
 0x76d   :  { %v956_v15 = vpop.eup %955 }
 0x76e   :  { %v620_v11 = vmul.f32 %v956_v15, %v618_v10 }
 0x7cf   :  { %v623_v8 = vpop.permute.xlu1 %622 }
 0x7d0   :  { %v625_v9 = vmul.f32 %v956_v15, %v623_v8 }
 0x7d2   :  { %627 = vrot.lane.b32.xlu1 %v625_v9, %s1064_s12 }
 0x7d6   :  { %643 = vrot.lane.b32.xlu1 %v378_v52, %s1064_s12 }
 0x844   :  { %v628_v12 = vpop.permute.xlu1 %627 }
 0x845   :  { %v630_v13 = vadd.f32 %v628_v12, %v620_v11 }
 0x847   :  { %957 = vtanh.f32 %v630_v13 }
 0x848   :  { %v644_v19 = vpop.permute.xlu1 %643 }
 0x849   :  { %864 = vmatprep.mubr.msk.f32.mxu0 %vm238_vm4, %v644_v19 }
 0x851   :  { %v958_v24 = vpop.eup %957 }
 0x852   :  { %633 = vrot.lane.b32.xlu0 %v958_v24, %s1058_s0 }
 0x8c4   :  { %v634_v25 = vpop.permute.xlu0 %633 }
 0x8c5   :  { %v636_v26 = vmul.f32 %v956_v15, %v634_v25 }
 0x8c7   :  { %645 = vrot.lane.b32.xlu0 %v636_v26, %s1064_s12 }
 0x939   :  { %v646_v27 = vpop.permute.xlu0 %645 }
 0x93a   :  { %865 = vmatmul.mubr.msk.f32.vlgmr.msra.gmra.mrb[2].mxu0 %vm238_vm4, %v646_v27 }
 0xa0d   :  { %v866_v30 = vpop.f32.mrb[2].mxu0 }
 0xa0e   :  { %v723_v31 = vadd.f32 %v866_v30, %v640_v29  ;;  %v717_v32 = vpop.f32.mrb[3].mxu0 }
 0xa0f   :  { %v718_v33 = vadd.f32 %v717_v32, %v640_v29 }
 0xa10   :  { %727 = vst [vmem:[%s1228_s4 + $0x8] sm:$0xff] %v723_v31 }
 0xa11   :  { %726 = vst [vmem:[%s1228_s4] sm:$0xff] %v718_v33 }
 0xa12   :  { %732 = vsyncpa [#allocation3], 1 }
 0xa13   :  { %733 = vsyncpa [#allocation5], 1 }
 0xa14   :  { %734 = vsyncpa [#allocation8], 1 }

</bundles_post_ra>
